<compile_context>
chip_gen: v5e
topology: v5e:2x2
jax: 0.10.0
libtpu: 0.0.40
codegen_flags: <defaults>
</compile_context>

<pallas_src>
import jax
import jax.numpy as jnp
import numpy as np
from jax.experimental import pallas as pl
from jax.experimental.pallas import tpu as pltpu


def _diag2d_kernel(x_ref, m_ref, o_ref):
    """One (batch, row-tile) diagonal block per grid step.

    x_ref : (1, ti, ti, D)  A.data[b, i0:i0+ti, i0:i0+ti, :]
    m_ref : (1, ti, 1)      diagonal mask (0/1) for rows i0:i0+ti
    o_ref : (1, ti, D)      out[b, i0:i0+ti, :]
    """
    x = x_ref[0]                                             # (ti, ti, D)
    ti = x.shape[0]

    # Select x[r, r, :] via an identity mask and reduce over the leading axis
    # (cross-vreg VPU adds; no XLU transpose, no lane gather).
    q = jax.lax.broadcasted_iota(jnp.int32, (ti, ti, 1), 0)
    r = jax.lax.broadcasted_iota(jnp.int32, (ti, ti, 1), 1)
    picked = jnp.where(q == r, x, jnp.zeros_like(x))         # keep x[r, r, :]
    diag = jnp.sum(picked, axis=0)                           # (ti, D) = x[r, r, :]

    # MaskedTensor: zero-fill outside the output mask (broadcast over D here,
    # never materialized at (B, N, D) in HBM).
    o_ref[0] = (diag * m_ref[0]).astype(o_ref.dtype)


def _pick_row_tile(n: int) -> int:
    """Largest sublane-aligned tile (<=64) dividing N; fall back to full N."""
    for cand in (64, 32, 16, 8):
        if n % cand == 0:
            return cand
    return n  # full-dim block is always layout-legal


def op_diag(X, X_mask, *, dims=(1, 2)):
    """JAX/Pallas equivalent of OpDiag(dims).forward(MaskedTensor(X, X_mask)).

    X      : (B, N, N, D) float data of the masked 2D representation
    X_mask : (B, N, N)    bool mask
    Returns (out_data, out_mask) = ((B, N, D), (B, N)) -- the MaskedTensor pair,
    with out_data zero-filled where out_mask is False.
    """
    dims = sorted(set(int(d) for d in dims))
    # TODO(synk): general `dims` (arbitrary subsets / >2 masked dims) not implemented;
    # this covers the OpDiag2D case used in pygho HONN.
    assert dims == [1, 2], "only dims=(1, 2) on a (B, N, N, D) MaskedTensor is supported"

    B, N, N2, D = X.shape
    assert N == N2 and X_mask.shape == (B, N, N)

    # Output mask = diagonal of the input mask (pure metadata plumbing).
    out_mask = jnp.diagonal(X_mask, axis1=1, axis2=2)        # (B, N) bool
    m_f = out_mask.astype(X.dtype)[..., None]                # (B, N, 1)

    ti = _pick_row_tile(N)
    grid = (B, N // ti)

    out = pl.pallas_call(
        _diag2d_kernel,
        out_shape=jax.ShapeDtypeStruct((B, N, D), X.dtype),
        grid_spec=pltpu.PrefetchScalarGridSpec(
            num_scalar_prefetch=0,
            grid=grid,
            in_specs=[
                # Only the diagonal (ti, ti, D) blocks of X are DMA'd.
                pl.BlockSpec((1, ti, ti, D), lambda b, ib: (b, ib, ib, 0)),
                pl.BlockSpec((1, ti, 1), lambda b, ib: (b, ib, 0)),
            ],
            out_specs=pl.BlockSpec((1, ti, D), lambda b, ib: (b, ib, 0)),
        ),
        compiler_params=pltpu.CompilerParams(
            dimension_semantics=("parallel", "parallel")),
    )(X, m_f)

    return out, out_mask


if __name__ == "__main__":
    B, N, D = 2, 8, 32

    key = jax.random.PRNGKey(0)
    k1, k2 = jax.random.split(key)

    # Masked 2D representation with per-graph node counts (as in pygho).
    X = jax.random.normal(k1, (B, N, N, D), jnp.float32)
    nnodes = jnp.array([6, 8], dtype=jnp.int32)
    node_mask = jnp.arange(N)[None, :] < nnodes[:, None]      # (B, N)
    X_mask = node_mask[:, :, None] & node_mask[:, None, :]    # (B, N, N)

    out, out_mask = op_diag(X, X_mask, dims=(1, 2))
    out = jax.block_until_ready(out)

    # Pure-JAX reference of MaskedTensor.diag((1, 2)).
    idx = jnp.arange(N)
    ref_mask = X_mask[:, idx, idx]                            # (B, N)
    ref = X[:, idx, idx, :] * ref_mask[..., None].astype(X.dtype)

    np.testing.assert_allclose(np.asarray(out), np.asarray(ref),
                               rtol=1e-6, atol=1e-6)
    np.testing.assert_array_equal(np.asarray(out_mask), np.asarray(ref_mask))
    print("KERNEL_OK")
</pallas_src>

<mosaic_0001>
module attributes {stable_mosaic.version = 11 : i64} {
  func.func @_diag2d_kernel(%arg0: i32, %arg1: i32, %arg2: memref<1x8x8x32xf32, #tpu.memory_space<vmem>>, %arg3: memref<1x8x1xf32, #tpu.memory_space<vmem>>, %arg4: memref<1x8x32xf32, #tpu.memory_space<vmem>>) attributes {dimension_semantics = [#tpu.dimension_semantics<parallel>, #tpu.dimension_semantics<parallel>], iteration_bounds = array<i64: 2, 1>, scalar_prefetch = 0 : i64, scratch_operands = 0 : i64, tpu.core_type = #tpu.core_type<tc>, window_params = [{transform_indices = @transform_0, window_bounds = array<i64: 1, 8, 8, 32>}, {transform_indices = @transform_1, window_bounds = array<i64: 1, 8, 1>}, {transform_indices = @transform_2, window_bounds = array<i64: 1, 8, 32>}]} {
    %c0 = arith.constant 0 : index
    %c0_0 = arith.constant 0 : index
    %c0_1 = arith.constant 0 : index
    %c0_2 = arith.constant 0 : index
    %0 = vector.load %arg2[%c0, %c0_0, %c0_1, %c0_2] : memref<1x8x8x32xf32, #tpu.memory_space<vmem>>, vector<1x8x8x32xf32>
    %1 = vector.shape_cast %0 : vector<1x8x8x32xf32> to vector<8x8x32xf32>
    %2 = tpu.iota {dimensions = array<i32: 0>} : vector<8x8x1xi32>
    %3 = tpu.iota {dimensions = array<i32: 1>} : vector<8x8x1xi32>
    %4 = arith.cmpi eq, %2, %3 : vector<8x8x1xi32>
    %cst = arith.constant 0.000000e+00 : f32
    %5 = vector.broadcast %cst : f32 to vector<8x8x32xf32>
    %6 = vector.shape_cast %4 : vector<8x8x1xi1> to vector<8x8x1xi1>
    %7 = vector.broadcast %6 : vector<8x8x1xi1> to vector<8x8x32xi1>
    %8 = arith.select %7, %1, %5 : vector<8x8x32xi1>, vector<8x8x32xf32>
    %cst_3 = arith.constant dense<0.000000e+00> : vector<8x32xf32>
    %9 = vector.multi_reduction <add>, %8, %cst_3 [0] : vector<8x8x32xf32> to vector<8x32xf32>
    %c0_4 = arith.constant 0 : index
    %c0_5 = arith.constant 0 : index
    %c0_6 = arith.constant 0 : index
    %10 = vector.load %arg3[%c0_4, %c0_5, %c0_6] : memref<1x8x1xf32, #tpu.memory_space<vmem>>, vector<1x8x1xf32>
    %11 = vector.shape_cast %10 : vector<1x8x1xf32> to vector<8x1xf32>
    %12 = vector.broadcast %11 : vector<8x1xf32> to vector<8x32xf32>
    %13 = arith.mulf %9, %12 : vector<8x32xf32>
    %c0_7 = arith.constant 0 : index
    %c0_8 = arith.constant 0 : index
    %c0_9 = arith.constant 0 : index
    %14 = vector.load %arg4[%c0_7, %c0_8, %c0_9] : memref<1x8x32xf32, #tpu.memory_space<vmem>>, vector<1x8x32xf32>
    %15 = vector.shape_cast %14 : vector<1x8x32xf32> to vector<8x32xf32>
    %16 = vector.shape_cast %13 : vector<8x32xf32> to vector<1x8x32xf32>
    tpu.vector_store %arg4[%c0_7, %c0_8, %c0_9], %16 {strides = array<i32>} : memref<1x8x32xf32, #tpu.memory_space<vmem>>, vector<1x8x32xf32>,
    return
  }
  func.func @transform_0(%arg0: i32, %arg1: i32) -> (i32, i32, i32, i32) {
    %c0_i32 = arith.constant 0 : i32
    %c0_i32_0 = arith.constant 0 : i32
    return %arg0, %arg1, %arg1, %c0_i32 : i32, i32, i32, i32
  }
  func.func @transform_1(%arg0: i32, %arg1: i32) -> (i32, i32, i32) {
    %c0_i32 = arith.constant 0 : i32
    %c0_i32_0 = arith.constant 0 : i32
    return %arg0, %arg1, %c0_i32 : i32, i32, i32
  }
  func.func @transform_2(%arg0: i32, %arg1: i32) -> (i32, i32, i32) {
    %c0_i32 = arith.constant 0 : i32
    %c0_i32_0 = arith.constant 0 : i32
    return %arg0, %arg1, %c0_i32 : i32, i32, i32
  }
}

</mosaic_0001>

<bundles_post_ra>
// kernel: tpu_custom_call.1
= control target key start
LH: loop header
LB: loop body
LE: loop exit
PB: predicated region body
PF: predicated region fallthrough
CT: control target
= control target key end

     0   :  { %7 = vsyncpa [#allocation3], 0  ;;  %s762_s0 = inlined_call_operand.hbm [shape: f32[2,8,8,32], index: 0, kind: input, shape index: {}]   ;;  %s763_s1 = inlined_call_operand.vmem [shape: f32[2,8,1], index: 1, kind: input, shape index: {}]   ;;  %s764_s2 = inlined_call_operand.hbm [shape: f32[2,8,32], index: 2, kind: output, shape index: {}]  }
   0x1   :  { %9 = vsyncpa [#allocation3 + $0x1], 0 }
   0x2   :  { %10 = vsyncpa [#allocation4], 0 }
   0x3   :  { %12 = vsyncpa [#allocation4 + $0x1], 0  ;;  %s617_s9 = smov 0   ;;  %s619_s10 = smov 0  }
   0x4   :  { %s621_s11 = smov 0   ;;  %s623_s12 = smov 0  }
   0x5   :  { %s625_s13 = smov 0   ;;  %s627_s14 = smov 0  }
   0x6 LB: > { %s395_s15 = sadd.s32 4294967295, %s597_s14   ;;  %s396_s16 = sadd.s32 4294967294, %s597_s14   ;;  %s597_s14 = sphi %s627_s14, %s18_s14   ;;  %s593_s13 = sphi %s625_s13, %s773_s13   ;;  %s589_s12 = sphi %s623_s12, %s772_s12   ;;  %s585_s11 = sphi %s621_s11, %s771_s11   ;;  %s581_s10 = sphi %s619_s10, %s770_s10   ;;  %s577_s9 = sphi %s617_s9, %s769_s9  }
   0x7   : > { %s30_s17 = sadd.s32 1, %s593_s13  ;;  %s41_s18 = sadd.s32 1, %s585_s11 }
   0x8   : > { %p32_p0 = scmp.ge.s32.totalorder %s30_s17, 2  ;;  %p48_p1 = scmp.ne.s32.totalorder %s585_s11, %s581_s10 }
   0x9   : > { %p49_p2 = scmp.eq.s32.totalorder %s597_s14, 0  ;;  %p54_p3 = scmp.ne.s32.totalorder %s581_s10, %s577_s9 }
   0xa   : > { %s775_s17 = smov (%p32_p0, %s30_s17), 0  ;;  %p55_p5 = scmp.eq.s32.totalorder %s395_s15, 0 }
   0xb   : > { %p658_p4 = por %p49_p2, %p48_p1  ;;  %s34_s20 = ssub.s32 %s593_s13, %s775_s17 }
   0xc   : > { %p108_p6 = scmp.eq.s32.totalorder %s395_s15, 1  ;;  %p39_p7 = scmp.eq.s32.totalorder %s34_s20, 0 }
   0xd   : > { %p664_p8 = por %p55_p5, %p54_p3  ;;  %p114_p10 = scmp.eq.s32.totalorder %s396_s16, 1 }
   0xe   : > { %p668_p9 = por %p108_p6, %p48_p1  ;;  %p398_p12 = scmp.ge.s32.totalorder %s597_s14, 2 }
   0xf   : > { %s673_s23 = scalar_select %p39_p7, %s585_s11, %s41_s18  }
  0x10   : > { %p675_p11 = por %p114_p10, %p54_p3  ;;  %p431_p13 = scmp.lt.s32.totalorder %s597_s14, 2 }
  0x11   : > { %s134_s25 = sand.u32 1, %s585_s11   ;;  %s410_s27 = sshll.u32 %s593_s13, 6 }
  0x12   : > { %s399_s26 = sshll.u32 %s134_s25, 6  ;;  %s146_s30 = scalar_lea.hbm %s762_s0, %s410_s27 }
  0x13   : > { %s138_s3 = scalar_lea.vmem [#allocation2], %s399_s26  ;;  %s147_s5 = sshll.u32 %s146_s30, 4  ;;  %s148_s5 = int_to_ptr.hbm [resolvable:$true] %s147_s5 }
  0x14   : > { %s149_s4 = sshll.u32 %s138_s3, 4  ;;  %p424_p0 = pnand %p431_p13, %p658_p4  ;;  %s150_s4 = int_to_ptr.vmem [resolvable:$true] %s149_s4 }
  0x15   : > { %p402_p1 = scmp.ge.s32.totalorder %s597_s14, 1  ;;  %s135_s6 = scalar_lea.sflag [#allocation3], %s134_s25 }
  0x16   : > { %s599_s7 = smov 128   ;;  %s600_s8 = smov 8  }
  0x17   : > { %426 = dma.hbm_to_vmem [thread:$0]  (!%p424_p0), %s148_s5, 1024, %s150_s4, %s135_s6, %s599_s7, %s599_s7, %s600_s8  }
  0x18   : > { %p167_p2 = scmp.lt.s32.totalorder %s597_s14, 3 }
  0x1a   : > { %p168_p3 = pnand %p402_p1, %p167_p2 }
  0x1b   : > { %s691_s15 = sand.u32 (!%p168_p3), 1, %s581_s10  }
  0x1c   : > { %171 = sbr.rel (%p168_p3) target bundleno = 161 (0xa1), region = 28  ;;  %s403_s16 = sshll.u32 (!%p168_p3), %s691_s15, 6 }
  0x1d   : > { %s174_s18 = scalar_lea.sflag (!%p168_p3), [#allocation3], %s691_s15  ;;  %s695_s20 = scalar_lea.vmem (!%p168_p3), [#allocation2], %s403_s16 }
  0x21   : > { %568 = dma.done.wait (%p664_p8), %s174_s18, 1024  }
  0x22   : > { %570 = vsyncadd (%p664_p8), %s174_s18, 4294966272  ;;  %p207_p4 = scmp.lt.s32.totalorder %s589_s12, 1  ;;  %v601_v0 = vmov 0   ;;  %vm256_vm0 = vcmask 261120   ;;  %v411_v2 = vld [vmem:[%s695_s20] sm:$0x1] }
  0x23   : > { %484 = vset.pattern.permute.xlu0 %v601_v0  ;;  %v412_v3 = vld [vmem:[%s695_s20 + $0x8] sm:$0x2]  ;;  %v257_v4 = vsel %vm256_vm0, %v411_v2, 0.0  ;;  %v413_v6 = vld [vmem:[%s695_s20 + $0x10] sm:$0x4]  ;;  %s404_s21 = sshll.u32 %s691_s15, 3 }
  0x24   : > { %s208_s19 = scalar_select %p207_p4, %s589_s12, 1  ;;  %v258_v5 = vsel %vm256_vm0, %v412_v3, 0.0  ;;  %v260_v8 = vsel %vm256_vm0, %v413_v6, 0.0  ;;  %v414_v9 = vld [vmem:[%s695_s20 + $0x18] sm:$0x8] }
  0x25   : > { %v259_v7 = vadd.f32 %v258_v5, %v257_v4  ;;  %v262_v11 = vsel %vm256_vm0, %v414_v9, 0.0  ;;  %v415_v12 = vld [vmem:[%s695_s20 + $0x20] sm:$0x10]  ;;  %v416_v15 = vld [vmem:[%s695_s20 + $0x28] sm:$0x20]  ;;  %s407_s29 = sshll.u32 %s589_s12, 3 }
  0x26   : > { %s405_s25 = sshll.u32 %s208_s19, 3  ;;  %v264_v14 = vsel %vm256_vm0, %v415_v12, 0.0  ;;  %v266_v17 = vsel %vm256_vm0, %v416_v15, 0.0  ;;  %v417_v18 = vld [vmem:[%s695_s20 + $0x30] sm:$0x40]  ;;  %s292_s4 = scalar_lea.hbm %s764_s2, %s407_s29 }
  0x27   : > { %s213_s28 = scalar_lea.vmem %s763_s1, %s405_s25  ;;  %v261_v10 = vadd.f32 %v260_v8, %v259_v7  ;;  %v268_v20 = vsel %vm256_vm0, %v417_v18, 0.0  ;;  %v418_v21 = vld [vmem:[%s695_s20 + $0x38] sm:$0x80]  ;;  %s205_s5 = scalar_lea.vmem [#allocation5], %s404_s21 }
  0x28   : > { %v272_v1 = vld [vmem:[%s213_s28] sm:$0xff]  ;;  %v270_v23 = vsel %vm256_vm0, %v418_v21, 0.0  ;;  %s294_s6 = sshll.u32 %s205_s5, 4  ;;  %s296_s7 = sshll.u32 %s292_s4, 4  ;;  %s295_s6 = int_to_ptr.vmem [resolvable:$true] %s294_s6  ;;  %s297_s7 = int_to_ptr.hbm [resolvable:$true] %s296_s7 }
  0x29   : > { %275 = vperm.xlu0 %484, %v272_v1   ;;  %v263_v13 = vadd.f32 %v262_v11, %v261_v10  ;;  %s281_s8 = scalar_lea.sflag [#allocation4], %s691_s15  ;;  %s529_s12 = sshra.s32 %s297_s7, 4  ;;  %s530_s12 = int_to_ptr.hbm [resolvable:$true] %s529_s12 }
  0x2a   : > { %s531_s16 = scalar_lea.hbm %s530_s12, 8  ;;  %s535_s19 = scalar_lea.hbm %s764_s2, 16 }
  0x2b   : > { %v265_v16 = vadd.f32 %v264_v14, %v263_v13  ;;  %p532_p5 = scmp.ne.s32.totalorder %s530_s12, %s531_s16  ;;  %p536_p8 = scmp.lt.s32.totalorder %s530_s12, %s764_s2 }
  0x2c   : > { %p537_p10 = scmp.lt.s32.totalorder %s535_s19, %s531_s16 }
  0x2d   : > { %v267_v19 = vadd.f32 %v266_v17, %v265_v16  ;;  %p533_p6 = pnand %p532_p5, %p668_p9 }
  0x2e   : > { %p538_p13 = por %p537_p10, %p536_p8 }
  0x2f   : > { %v269_v22 = vadd.f32 %v268_v20, %v267_v19  ;;  %p534_p7 = pneg %p533_p6 }
  0x31   : > { %v271_v24 = vadd.f32 %v270_v23, %v269_v22  ;;  %p539_p0 = pnand %p538_p13, %p534_p7 }
  0x9b   : > { %v276_v25 = vpop.permute.xlu0 %275 }
  0x9c   : > { %v278_v26 = vmul.f32 %v276_v25, %v271_v24 }
  0x9e   : > { %279 = vst.msk [vmem:[%s205_s5] sm:$0xff] %vm256_vm0, %v278_v26 }
  0x9f   : > { %542 = shalt.err (!%p539_p0)
}
  0xa0   : > { %421 = dma.vmem_to_hbm [thread:$0]  (%p668_p9), %s295_s6, 128, %s297_s7, %s281_s8  }
  0xa1 PF: > { %s308_s15 = sand.u32 1, %s577_s9   ;;  %p428_p1 = pnand %p398_p12, %p675_p11 }
  0xa2   : > { %s309_s27 = scalar_lea.sflag [#allocation4], %s308_s15 }
  0xa3   : > { %p429_p2 = pneg %p428_p1 }
  0xa5   : > { %572 = dma.done.wait (%p429_p2), %s309_s27, 128  }
  0xa6   : > { %574 = vsyncadd (%p429_p2), %s309_s27, 4294967168  ;;  %s18_s14 = sadd.s32 1, %s597_s14   ;;  %s769_s9 = smov %s581_s10 }
  0xa7   : > { %p15_p3 = scmp.ge.s32.totalorder %s18_s14, 4   ;;  %s770_s10 = smov %s585_s11 }
  0xa8   : > { %s771_s11 = smov %s673_s23  ;;  %s772_s12 = smov %s593_s13 }
  0xa9   : > { %s773_s13 = smov %s775_s17  ;;  %17 = sbr.rel (!%p15_p3) target bundleno = 6 (0x6), region = 76 }
  0xae   :  { %315 = vsyncpa [#allocation3], 1 }
  0xaf   :  { %317 = vsyncpa [#allocation3 + $0x1], 1 }
  0xb0   :  { %318 = vsyncpa [#allocation4], 1 }
  0xb1   :  { %320 = vsyncpa [#allocation4 + $0x1], 1 }

</bundles_post_ra>
